<compile_context>
chip_gen: v7x
topology: tpu7x:2x2x1
jax: 0.10.0
libtpu: 0.0.40
codegen_flags: <defaults>
</compile_context>

<pallas_src>
import jax
import jax.numpy as jnp
from jax.experimental import pallas as pl
from jax.experimental.pallas import tpu as pltpu

HIDDEN = 10   # logical hidden width fixed by the PyTorch module
LANE = 128    # TPU lane width; hidden (and w3's lane dim) padded to this
SUB = 16      # sublane multiple that works for both f32 and bf16 x layouts


def _round_up(n, m):
    return (n + m - 1) // m * m


def hvvnet_kernel(x_ref, w1_ref, w2_ref, w3_ref, b_ref, o_ref):
    """Fused MLP forward for one batch tile.

    x_ref:  (TB, in_size)   caller dtype (f32 or bf16); cast in-kernel
    w1_ref: (in_size, HP)   compute dtype, HP = 128 (lane-padded hidden)
    w2_ref: (HP, HP)        compute dtype
    w3_ref: (HP, OP)        compute dtype, OP = round_up(out_size, 128)
    b_ref:  (8, max(HP,OP)) f32; row 0 = b1, row 1 = b2, row 2 = b3 (zero-pad)
    o_ref:  (TB, out_size)  f32  (narrow, lane-masked store; no 128-lane pad)
    """
    hp = w2_ref.shape[1]
    out_size = o_ref.shape[1]
    cdt = w1_ref.dtype

    b1 = b_ref[0:1, :hp]
    b2 = b_ref[1:2, :hp]
    b3 = b_ref[2:3, :out_size]

    x = x_ref[...].astype(cdt)

    # Linear(input_size, 10) + ReLU     (Dropout(0.2) -> identity at inference)
    h1 = jnp.dot(x, w1_ref[...], preferred_element_type=jnp.float32) + b1
    h1 = jnp.maximum(h1, 0.0)

    # Linear(10, 10) + ReLU             (Dropout(0.2) -> identity at inference)
    h2 = jnp.dot(h1.astype(cdt), w2_ref[...],
                 preferred_element_type=jnp.float32) + b2
    h2 = jnp.maximum(h2, 0.0)

    # Linear(10, output_size) + Sigmoid, only on the logical out_size lanes.
    z = jnp.dot(h2.astype(cdt), w3_ref[...],
                preferred_element_type=jnp.float32)
    z = z[:, :out_size] + b3
    # sigmoid(z) = 0.5*(1+tanh(z/2)): tanh goes to the EUP slot, no f32 divide,
    # no exp overflow for very negative z.
    o_ref[...] = 0.5 * (jnp.tanh(0.5 * z) + 1.0)


def prepare_params(params, compute_dtype=jnp.bfloat16):
    """One-time lane padding + dtype cast of the parameters (hoisted out of
    the per-call path).  Zero padding is numerically exact (ReLU(0)=0, zero
    rows/cols contribute 0 to the dots; padded output lanes are never stored).

    params: (w1, b1, w2, b2, w3, b3) with logical shapes
            (in, 10), (1, 10), (10, 10), (1, 10), (10, out), (1, out)
            i.e. y = x @ W + b  (equivalent to PyTorch x @ W.T + b).
    """
    w1, b1, w2, b2, w3, b3 = params
    in_size = w1.shape[0]
    out_size = w3.shape[1]
    hp = LANE
    op = _round_up(out_size, LANE)

    w1p = jnp.zeros((in_size, hp), compute_dtype).at[:, :HIDDEN].set(
        w1.astype(compute_dtype))
    w2p = jnp.zeros((hp, hp), compute_dtype).at[:HIDDEN, :HIDDEN].set(
        w2.astype(compute_dtype))
    w3p = jnp.zeros((hp, op), compute_dtype).at[:HIDDEN, :out_size].set(
        w3.astype(compute_dtype))

    bw = max(hp, op)
    bp = jnp.zeros((8, bw), jnp.float32)
    bp = bp.at[0, :HIDDEN].set(b1.reshape(-1).astype(jnp.float32))
    bp = bp.at[1, :HIDDEN].set(b2.reshape(-1).astype(jnp.float32))
    bp = bp.at[2, :out_size].set(b3.reshape(-1).astype(jnp.float32))

    return (w1p, w2p, w3p, bp, out_size)


def hvvnet_forward(x, padded_params, *, tile_b=2048):
    """Fused HVVNet forward via pallas_call, tiled over the batch.

    x:             (B, in_size), f32 or bf16 (pass bf16 for minimal HBM read).
    padded_params: result of prepare_params().
    """
    w1p, w2p, w3p, bp, out_size = padded_params
    B, in_size = x.shape
    assert in_size == w1p.shape[0], "input feature dim mismatch"

    hp = w2p.shape[1]
    op = w3p.shape[1]

    # ---- batch tile: large (amortize ~0.35us/step), multiple of SUB, but
    # capped so there are >= 2 grid programs (v7x two-TC / megacore sharding).
    tb = min(_round_up(tile_b, SUB), _round_up(B, SUB))
    if B > SUB:
        tb = min(tb, _round_up(pl.cdiv(B, 2), SUB))
    tb = max(tb, SUB)
    grid = (pl.cdiv(B, tb),)

    x_itemsize = jnp.dtype(x.dtype).itemsize
    w_itemsize = jnp.dtype(w1p.dtype).itemsize
    flops = 2 * B * (in_size * hp + hp * hp + hp * op)
    bytes_accessed = (B * in_size * x_itemsize
                      + (w1p.size + w2p.size + w3p.size) * w_itemsize
                      + bp.size * 4
                      + B * out_size * 4)

    full = lambda arr: pl.BlockSpec(arr.shape, lambda i: (0,) * arr.ndim)

    out = pl.pallas_call(
        hvvnet_kernel,
        out_shape=jax.ShapeDtypeStruct((B, out_size), jnp.float32),
        grid_spec=pltpu.PrefetchScalarGridSpec(
            num_scalar_prefetch=0,
            grid=grid,
            in_specs=[
                pl.BlockSpec((tb, in_size), lambda i: (i, 0)),  # x batch tile
                full(w1p), full(w2p), full(w3p), full(bp),      # resident params
            ],
            # Last dim == full array dim -> legal narrow (lane-masked) store.
            out_specs=pl.BlockSpec((tb, out_size), lambda i: (i, 0)),
        ),
        compiler_params=pltpu.CompilerParams(
            dimension_semantics=("parallel",),                  # megacore sharding
        ),
        cost_estimate=pl.CostEstimate(
            flops=flops, transcendentals=B * out_size,
            bytes_accessed=bytes_accessed),
    )(x, w1p, w2p, w3p, bp)

    return out


def init_params(key, input_size, output_size):
    """Deterministic synthetic parameters (shapes match the PyTorch module)."""
    k1, k2, k3, k4, k5, k6 = jax.random.split(key, 6)
    scale = 0.1
    w1 = scale * jax.random.normal(k1, (input_size, HIDDEN), jnp.float32)
    b1 = scale * jax.random.normal(k2, (1, HIDDEN), jnp.float32)
    w2 = scale * jax.random.normal(k3, (HIDDEN, HIDDEN), jnp.float32)
    b2 = scale * jax.random.normal(k4, (1, HIDDEN), jnp.float32)
    w3 = scale * jax.random.normal(k5, (HIDDEN, output_size), jnp.float32)
    b3 = scale * jax.random.normal(k6, (1, output_size), jnp.float32)
    return (w1, b1, w2, b2, w3, b3)


def reference_forward(x, params):
    """Pure-JAX f32 reference (inference semantics: dropout = identity)."""
    w1, b1, w2, b2, w3, b3 = params
    h1 = jnp.maximum(x @ w1 + b1, 0.0)
    h2 = jnp.maximum(h1 @ w2 + b2, 0.0)
    return jax.nn.sigmoid(h2 @ w3 + b3)


if __name__ == "__main__":
    input_size = 32
    output_size = 4
    batch = 200  # intentionally ragged: exercises the clipped last grid block

    key = jax.random.PRNGKey(0)
    kx, kp = jax.random.split(key)
    x = jax.random.normal(kx, (batch, input_size), jnp.float32)
    params = init_params(kp, input_size, output_size)

    # One-time parameter padding / casting (hoisted out of the forward path).
    padded = prepare_params(params, compute_dtype=jnp.bfloat16)

    out = hvvnet_forward(x, padded, tile_b=2048)
    out = jax.block_until_ready(out)

    ref = reference_forward(x, params)
    assert out.shape == (batch, output_size)
    # bf16 weight path: loosened tolerance vs the f32 reference.
    assert jnp.allclose(out, ref, atol=2e-2, rtol=2e-2), "mismatch vs reference"

    print("KERNEL_OK")
</pallas_src>

<mosaic_0001>
module attributes {stable_mosaic.version = 11 : i64} {
  func.func @hvvnet_kernel(%arg0: i32, %arg1: memref<112x32xf32, #tpu.memory_space<vmem>>, %arg2: memref<32x128xbf16, #tpu.memory_space<vmem>>, %arg3: memref<128x128xbf16, #tpu.memory_space<vmem>>, %arg4: memref<128x128xbf16, #tpu.memory_space<vmem>>, %arg5: memref<8x128xf32, #tpu.memory_space<vmem>>, %arg6: memref<112x4xf32, #tpu.memory_space<vmem>>) attributes {dimension_semantics = [#tpu.dimension_semantics<parallel>], iteration_bounds = array<i64: 2>, scalar_prefetch = 0 : i64, scratch_operands = 0 : i64, tpu.core_type = #tpu.core_type<tc>, window_params = [{transform_indices = @transform_0, window_bounds = array<i64: 112, 32>}, {pipeline_mode = #tpu.pipeline_mode<synchronous>, transform_indices = @transform_1, window_bounds = array<i64: 32, 128>}, {pipeline_mode = #tpu.pipeline_mode<synchronous>, transform_indices = @transform_2, window_bounds = array<i64: 128, 128>}, {pipeline_mode = #tpu.pipeline_mode<synchronous>, transform_indices = @transform_3, window_bounds = array<i64: 128, 128>}, {pipeline_mode = #tpu.pipeline_mode<synchronous>, transform_indices = @transform_4, window_bounds = array<i64: 8, 128>}, {transform_indices = @transform_5, window_bounds = array<i64: 112, 4>}]} {
    %c0 = arith.constant 0 : index
    %c0_0 = arith.constant 0 : index
    %0 = vector.load %arg5[%c0, %c0_0] : memref<8x128xf32, #tpu.memory_space<vmem>>, vector<1x128xf32>
    %c1 = arith.constant 1 : index
    %c0_1 = arith.constant 0 : index
    %1 = vector.load %arg5[%c1, %c0_1] : memref<8x128xf32, #tpu.memory_space<vmem>>, vector<1x128xf32>
    %c2 = arith.constant 2 : index
    %c0_2 = arith.constant 0 : index
    %2 = vector.load %arg5[%c2, %c0_2] : memref<8x128xf32, #tpu.memory_space<vmem>>, vector<1x4xf32>
    %c0_3 = arith.constant 0 : index
    %c0_4 = arith.constant 0 : index
    %3 = vector.load %arg1[%c0_3, %c0_4] : memref<112x32xf32, #tpu.memory_space<vmem>>, vector<112x32xf32>
    %4 = arith.truncf %3 : vector<112x32xf32> to vector<112x32xbf16>
    %c0_5 = arith.constant 0 : index
    %c0_6 = arith.constant 0 : index
    %5 = vector.load %arg2[%c0_5, %c0_6] : memref<32x128xbf16, #tpu.memory_space<vmem>>, vector<32x128xbf16>
    %cst = arith.constant dense<0.000000e+00> : vector<112x128xf32>
    %6 = tpu.matmul %4, %5, %cst {dimension_numbers = #tpu.dot_dimension_numbers<[1], [0], [0], [1], [0, 0, 1, 1], [], []>} : vector<112x32xbf16>, vector<32x128xbf16>, vector<112x128xf32> -> vector<112x128xf32>
    %7 = vector.broadcast %0 : vector<1x128xf32> to vector<112x128xf32>
    %8 = arith.addf %6, %7 : vector<112x128xf32>
    %cst_7 = arith.constant 0.000000e+00 : f32
    %9 = vector.broadcast %cst_7 : f32 to vector<112x128xf32>
    %10 = arith.maximumf %8, %9 : vector<112x128xf32>
    %11 = arith.truncf %10 : vector<112x128xf32> to vector<112x128xbf16>
    %c0_8 = arith.constant 0 : index
    %c0_9 = arith.constant 0 : index
    %12 = vector.load %arg3[%c0_8, %c0_9] : memref<128x128xbf16, #tpu.memory_space<vmem>>, vector<128x128xbf16>
    %cst_10 = arith.constant dense<0.000000e+00> : vector<112x128xf32>
    %13 = tpu.matmul %11, %12, %cst_10 {dimension_numbers = #tpu.dot_dimension_numbers<[1], [0], [0], [1], [0, 0, 1, 1], [], []>} : vector<112x128xbf16>, vector<128x128xbf16>, vector<112x128xf32> -> vector<112x128xf32>
    %14 = vector.broadcast %1 : vector<1x128xf32> to vector<112x128xf32>
    %15 = arith.addf %13, %14 : vector<112x128xf32>
    %cst_11 = arith.constant 0.000000e+00 : f32
    %16 = vector.broadcast %cst_11 : f32 to vector<112x128xf32>
    %17 = arith.maximumf %15, %16 : vector<112x128xf32>
    %18 = arith.truncf %17 : vector<112x128xf32> to vector<112x128xbf16>
    %c0_12 = arith.constant 0 : index
    %c0_13 = arith.constant 0 : index
    %19 = vector.load %arg4[%c0_12, %c0_13] : memref<128x128xbf16, #tpu.memory_space<vmem>>, vector<128x128xbf16>
    %cst_14 = arith.constant dense<0.000000e+00> : vector<112x128xf32>
    %20 = tpu.matmul %18, %19, %cst_14 {dimension_numbers = #tpu.dot_dimension_numbers<[1], [0], [0], [1], [0, 0, 1, 1], [], []>} : vector<112x128xbf16>, vector<128x128xbf16>, vector<112x128xf32> -> vector<112x128xf32>
    %21 = vector.extract_strided_slice %20 {offsets = [0, 0], sizes = [112, 4], strides = [1, 1]} : vector<112x128xf32> to vector<112x4xf32>
    %22 = vector.broadcast %2 : vector<1x4xf32> to vector<112x4xf32>
    %23 = arith.addf %21, %22 : vector<112x4xf32>
    %cst_15 = arith.constant 5.000000e-01 : f32
    %24 = vector.broadcast %cst_15 : f32 to vector<112x4xf32>
    %25 = arith.mulf %24, %23 : vector<112x4xf32>
    %26 = math.tanh %25 : vector<112x4xf32>
    %cst_16 = arith.constant 1.000000e+00 : f32
    %27 = vector.broadcast %cst_16 : f32 to vector<112x4xf32>
    %28 = arith.addf %26, %27 : vector<112x4xf32>
    %cst_17 = arith.constant 5.000000e-01 : f32
    %29 = vector.broadcast %cst_17 : f32 to vector<112x4xf32>
    %30 = arith.mulf %29, %28 : vector<112x4xf32>
    %c0_18 = arith.constant 0 : index
    %c0_19 = arith.constant 0 : index
    %31 = vector.load %arg6[%c0_18, %c0_19] : memref<112x4xf32, #tpu.memory_space<vmem>>, vector<112x4xf32>
    tpu.vector_store %arg6[%c0_18, %c0_19], %30 {strides = array<i32>} : memref<112x4xf32, #tpu.memory_space<vmem>>, vector<112x4xf32>,
    return
  }
  func.func @transform_0(%arg0: i32) -> (i32, i32) {
    %c0_i32 = arith.constant 0 : i32
    %c0_i32_0 = arith.constant 0 : i32
    return %arg0, %c0_i32 : i32, i32
  }
  func.func @transform_1(%arg0: i32) -> (i32, i32) {
    %c0_i32 = arith.constant 0 : i32
    %c0_i32_0 = arith.constant 0 : i32
    %c0_i32_1 = arith.constant 0 : i32
    return %c0_i32, %c0_i32_0 : i32, i32
  }
  func.func @transform_2(%arg0: i32) -> (i32, i32) {
    %c0_i32 = arith.constant 0 : i32
    %c0_i32_0 = arith.constant 0 : i32
    %c0_i32_1 = arith.constant 0 : i32
    return %c0_i32, %c0_i32_0 : i32, i32
  }
  func.func @transform_3(%arg0: i32) -> (i32, i32) {
    %c0_i32 = arith.constant 0 : i32
    %c0_i32_0 = arith.constant 0 : i32
    %c0_i32_1 = arith.constant 0 : i32
    return %c0_i32, %c0_i32_0 : i32, i32
  }
  func.func @transform_4(%arg0: i32) -> (i32, i32) {
    %c0_i32 = arith.constant 0 : i32
    %c0_i32_0 = arith.constant 0 : i32
    %c0_i32_1 = arith.constant 0 : i32
    return %c0_i32, %c0_i32_0 : i32, i32
  }
  func.func @transform_5(%arg0: i32) -> (i32, i32) {
    %c0_i32 = arith.constant 0 : i32
    %c0_i32_0 = arith.constant 0 : i32
    return %arg0, %c0_i32 : i32, i32
  }
}

</mosaic_0001>

<bundles_post_ra>
// kernel: tpu_custom_call.1
= control target key start
LH: loop header
LB: loop body
LE: loop exit
PB: predicated region body
PF: predicated region fallthrough
CT: control target
= control target key end

     0   :  { %s1583_s18 = smov 0   ;;  %s1585_s19 = smov 0   ;;  %s1938_s0 = inlined_call_operand.vmem [shape: f32[200,32], index: 0, kind: input, shape index: {}]   ;;  %s1939_s1 = inlined_call_operand.vmem [shape: bf16[32,128], index: 1, kind: input, shape index: {}]   ;;  %s1940_s2 = inlined_call_operand.vmem [shape: bf16[128,128], index: 2, kind: input, shape index: {}]   ;;  %s1941_s3 = inlined_call_operand.vmem [shape: bf16[128,128], index: 3, kind: input, shape index: {}]   ;;  %s1942_s4 = inlined_call_operand.vmem [shape: f32[8,128], index: 4, kind: input, shape index: {}]   ;;  %s1943_s5 = inlined_call_operand.vmem [shape: f32[200,4], index: 5, kind: output, shape index: {}]  }
   0x1   :  { %s1587_s20 = smov 0  }
   0x2 LB: > { %s1596_s21 = sadd.s32 4294967295, %s1517_s20   ;;  %s1598_s22 = sadd.s32 1, %s1517_s20   ;;  %s1517_s20 = sphi %s1587_s20, %s1950_s20   ;;  %s1513_s19 = sphi %s1585_s19, %s1949_s19   ;;  %s1509_s18 = sphi %s1583_s18, %s1948_s18  }
   0x3   : > { %s129_s23 = ssub.s32 %s1517_s20, %s1598_s22  ;;  %s132_s24 = sadd.s32 1, %s1513_s19 }
   0x4   : > { %p130_p0 = scmp.eq.s32.totalorder %s129_s23, 0  ;;  %p142_p1 = scmp.ne.s32.totalorder %s1513_s19, %s1509_s18 }
   0x5   : > { %p143_p2 = scmp.eq.s32.totalorder %s1596_s21, 1  ;;  %p1115_p3 = scmp.ge.s32.totalorder %s1517_s20, 1 }
   0x6   : > { %s1606_s25 = scalar_select %p130_p0, %s1513_s19, %s132_s24  }
   0x7   : > { %p1608_p4 = por %p143_p2, %p142_p1  ;;  %p196_p5 = scmp.lt.s32.totalorder %s1517_s20, 3 }
   0x9   : > { %p197_p6 = pnand %p1115_p3, %p196_p5 }
   0xa   : > { %v1413_v0 = vld [vmem:[%s1939_s1] sm:$0xff] (!%p197_p6)   ;;  %v1551_v1 = vmov (!%p197_p6), 0.0   ;;  %v1414_v2 = vld [vmem:[%s1939_s1 + $0x8] sm:$0xff] (!%p197_p6)   ;;  %vm1552_vm0 = vmmov (!%p197_p6), 0   ;;  %s1623_s6 = smul.u32 (!%p197_p6), 14, %s1596_s21  ;;  %vm291_vm1 = vcmask (!%p197_p6), 261120  }
   0xb   : > { %200 = sbr.rel (%p197_p6) target bundleno = 808 (0x328), region = 40  ;;  %1197 = vmatprep.subr.bf16.mxu0 (!%p197_p6), %v1551_v1  ;;  %1317 = vmatprep.subr.bf16.mxu1 (!%p197_p6), %v1551_v1  ;;  %v1415_v8 = vld [vmem:[%s1940_s2] sm:$0xff] (!%p197_p6)   ;;  %v1416_v14 = vld [vmem:[%s1940_s2 + $0x8] sm:$0xff] (!%p197_p6)   ;;  %v1417_v17 = vld [vmem:[%s1940_s2 + $0x10] sm:$0xff] (!%p197_p6)   ;;  %s224_s14 = sand.u32 (!%p197_p6), 1, %s1509_s18   ;;  %vm828_vm2 = vcmask (!%p197_p6), 31744  }
   0xc   : > { %1198 = vmatpush3.bf16.msra.mxu0 (!%p197_p6), %v1413_v0  ;;  %1201 = vmatprep.mubr.msk.bf16.mxu0 (!%p197_p6), %vm1552_vm0, %v1551_v1  ;;  %p232_p7 = scmp.lt.s32.totalorder (!%p197_p6), %s1623_s6, 24  ;;  %v1418_v23 = vld [vmem:[%s1940_s2 + $0x18] sm:$0xff] (!%p197_p6)   ;;  %v1419_v25 = vld [vmem:[%s1940_s2 + $0x20] sm:$0xff] (!%p197_p6)   ;;  %v1420_v29 = vld [vmem:[%s1940_s2 + $0x28] sm:$0xff] (!%p197_p6)   ;;  %s1321_s15 = smul.u32 (!%p197_p6), 112, %s224_s14 }
   0xd   : > { %1199 = vmatprep.subr.bf16.mxu0 (!%p197_p6), %v1551_v1  ;;  %1319 = vmatpush3.bf16.msra.mxu1 (!%p197_p6), %v1413_v0  ;;  %v1421_v30 = vld [vmem:[%s1940_s2 + $0x30] sm:$0xff] (!%p197_p6)   ;;  %v1422_v31 = vld [vmem:[%s1940_s2 + $0x38] sm:$0xff] (!%p197_p6)   ;;  %v1423_v32 = vld [vmem:[%s1941_s3] sm:$0xff] (!%p197_p6)  }
   0xe   : > { %1318 = vmatprep.subr.bf16.mxu1 (!%p197_p6), %v1551_v1  ;;  %1217 = vmatprep.mubr.msk.bf16.mxu1 (!%p197_p6), %vm1552_vm0, %v1551_v1  ;;  %v1424_v33 = vld [vmem:[%s1941_s3 + $0x8] sm:$0xff] (!%p197_p6)   ;;  %v1425_v34 = vld [vmem:[%s1941_s3 + $0x10] sm:$0xff] (!%p197_p6)   ;;  %v1426_v35 = vld [vmem:[%s1941_s3 + $0x18] sm:$0xff] (!%p197_p6)   ;;  %s1809_s18 = scalar_lea.vmem (!%p197_p6), [#allocation2], %s1321_s15  }
   0xf   : > { %v1427_v36 = vld [vmem:[%s1941_s3 + $0x20] sm:$0xff] (!%p197_p6)   ;;  %v1428_v37 = vld [vmem:[%s1941_s3 + $0x28] sm:$0xff] (!%p197_p6)  }
  0x10   : > { %1200 = vmatpush3.bf16.msra.mxu0 (!%p197_p6), %v1414_v2  ;;  %v1731_v38 = vld [vmem:[%s1942_s4] ss:$0 sm:$0xff] (!%p197_p6) }
  0x11   : > { %1320 = vmatpush3.bf16.msra.mxu1 (!%p197_p6), %v1414_v2  ;;  %1273 = vmatprep.subr.bf16.mxu0 (!%p197_p6), %v1551_v1 }
  0x12   : > { %s233_s7 = scalar_select %p232_p7, %s1623_s6, 24  ;;  %1229 = vmatprep.subr.bf16.mxu1 %v1551_v1 }
  0x13   : > { %s851_s16 = ssub.s32 (%p1608_p4), 25, %s1623_s6  ;;  %s1157_s17 = smul.u32 (%p1608_p4), 112, %s1596_s21 }
  0x14   : > { %s1116_s8 = sshll.u32 %s233_s7, 3  ;;  %p852_p8 = scmp.lt.s32.totalorder (%p1608_p4), %s851_s16, 14 }
  0x15   : > { %s1636_s11 = scalar_lea.vmem %s1938_s0, %s1116_s8  ;;  %s1854_s24 = scalar_lea.vmem (%p1608_p4), %s1943_s5, %s1157_s17  }
  0x16   : > { %v250_v3 = vld [vmem:[%s1636_s11] sm:$0xff]  ;;  %v251_v4 = vld [vmem:[%s1636_s11 + $0x8] sm:$0xff]  ;;  %v252_v9 = vld [vmem:[%s1636_s11 + $0x10] sm:$0xff] }
  0x17   : > { %v264_v5 = vpack.c.bf16 %v251_v4, %v250_v3  ;;  %v258_v6 = vld [vmem:[%s1636_s11 + $0x40] sm:$0xff]  ;;  %v259_v7 = vld [vmem:[%s1636_s11 + $0x48] sm:$0xff]  ;;  %v253_v10 = vld [vmem:[%s1636_s11 + $0x18] sm:$0xff] }
  0x18   : > { %v268_v11 = vpack.c.bf16 %v259_v7, %v258_v6  ;;  %v260_v12 = vld [vmem:[%s1636_s11 + $0x50] sm:$0xff]  ;;  %v261_v13 = vld [vmem:[%s1636_s11 + $0x58] sm:$0xff]  ;;  %v265_v15 = vpack.c.bf16 %v253_v10, %v252_v9  ;;  %v254_v18 = vld [vmem:[%s1636_s11 + $0x20] sm:$0xff] }
  0x19   : > { %1202 = vmatmul.mubr.msk.bf16.vlgmr.msra.gmra.mrb[0].mxu0 %vm291_vm1, %v264_v5  ;;  %v269_v16 = vpack.c.bf16 %v261_v13, %v260_v12  ;;  %v255_v19 = vld [vmem:[%s1636_s11 + $0x28] sm:$0xff]  ;;  %v262_v21 = vld [vmem:[%s1636_s11 + $0x60] sm:$0xff]  ;;  %v256_v26 = vld [vmem:[%s1636_s11 + $0x30] sm:$0xff] }
  0x1a   : > { %1205 = vmatprep.mubr.msk.bf16.mxu0 %vm1552_vm0, %v1551_v1  ;;  %1218 = vmatmul.mubr.msk.bf16.vlgmr.msra.gmra.mrb[0].mxu1 %vm291_vm1, %v268_v11  ;;  %v266_v20 = vpack.c.bf16 %v255_v19, %v254_v18  ;;  %v263_v22 = vld [vmem:[%s1636_s11 + $0x68] sm:$0xff]  ;;  %v257_v27 = vld [vmem:[%s1636_s11 + $0x38] sm:$0xff] }
  0x1b   : > { %1221 = vmatprep.mubr.msk.bf16.mxu1 %vm1552_vm0, %v1551_v1  ;;  %1230 = vmatpush3.bf16.msra.mxu1 %v1415_v8  ;;  %v270_v24 = vpack.c.bf16 %v263_v22, %v262_v21  ;;  %v267_v28 = vpack.c.bf16 %v257_v27, %v256_v26 }
  0x1c   : > { %1231 = vmatprep.subr.bf16.mxu1 %v1551_v1  ;;  %1274 = vmatpush3.bf16.msra.mxu0 %v1423_v32 }
  0x1d   : > { %1275 = vmatprep.subr.bf16.mxu0 %v1551_v1 }
  0x1f   : > { %1232 = vmatpush3.bf16.msra.mxu1 %v1416_v14 }
  0x20   : > { %1233 = vmatprep.subr.bf16.mxu1 %v1551_v1  ;;  %1276 = vmatpush3.bf16.msra.mxu0 %v1424_v33 }
  0x21   : > { %1206 = vmatmul.mubr.msk.bf16.gmra.mrb[4].mxu0 %vm291_vm1, %v265_v15  ;;  %1277 = vmatprep.subr.bf16.mxu0 %v1551_v1 }
  0x22   : > { %1209 = vmatprep.mubr.msk.bf16.mxu0 %vm1552_vm0, %v1551_v1  ;;  %1222 = vmatmul.mubr.msk.bf16.gmra.mrb[4].mxu1 %vm291_vm1, %v269_v16 }
  0x23   : > { %1225 = vmatprep.mubr.msk.bf16.mxu1 %vm1552_vm0, %v1551_v1  ;;  %1234 = vmatpush3.bf16.msra.mxu1 %v1417_v17 }
  0x24   : > { %1235 = vmatprep.subr.bf16.mxu1 %v1551_v1  ;;  %1278 = vmatpush3.bf16.msra.mxu0 %v1425_v34 }
  0x25   : > { %1279 = vmatprep.subr.bf16.mxu0 %v1551_v1 }
  0x27   : > { %1236 = vmatpush3.bf16.msra.mxu1 %v1418_v23 }
  0x28   : > { %1237 = vmatprep.subr.bf16.mxu1 %v1551_v1  ;;  %1280 = vmatpush3.bf16.msra.mxu0 %v1426_v35 }
  0x29   : > { %1210 = vmatmul.mubr.msk.bf16.gmra.mrb[8].mxu0 %vm291_vm1, %v266_v20  ;;  %1281 = vmatprep.subr.bf16.mxu0 %v1551_v1 }
  0x2a   : > { %1213 = vmatprep.mubr.msk.bf16.mxu0 %vm1552_vm0, %v1551_v1  ;;  %1226 = vmatmul.mubr.msk.bf16.gmra.mrb[8].mxu1 %vm291_vm1, %v270_v24 }
  0x2b   : > { %1238 = vmatpush3.bf16.msra.mxu1 %v1419_v25  ;;  %1245 = vmatprep.mubr.msk.bf16.mxu1 %vm1552_vm0, %v1551_v1 }
  0x2c   : > { %1239 = vmatprep.subr.bf16.mxu1 %v1551_v1  ;;  %1282 = vmatpush3.bf16.msra.mxu0 %v1427_v36 }
  0x2d   : > { %1283 = vmatprep.subr.bf16.mxu0 %v1551_v1 }
  0x2f   : > { %1240 = vmatpush3.bf16.msra.mxu1 %v1420_v29 }
  0x30   : > { %1241 = vmatprep.subr.bf16.mxu1 %v1551_v1  ;;  %1284 = vmatpush3.bf16.msra.mxu0 %v1428_v37 }
  0x31   : > { %1214 = vmatmul.mubr.msk.bf16.gmra.mrb[12].mxu0 %vm291_vm1, %v267_v28  ;;  %1285 = vmatprep.subr.bf16.mxu0 %v1551_v1 }
  0x32   : > { %1289 = vmatprep.mubr.msk.bf16.mxu0 %vm1552_vm0, %v1551_v1 }
  0x33   : > { %1242 = vmatpush3.bf16.msra.mxu1 %v1421_v30 }
  0x34   : > { %1243 = vmatprep.subr.bf16.mxu1 %v1551_v1 }
  0x37   : > { %1244 = vmatpush3.bf16.msra.mxu1 %v1422_v31 }
  0xec   : > { %v347_v39 = vpop.f32.mrb[0].mxu0 }
  0xed   : > { %v348_v40 = vadd.f32 %v1731_v38, %v347_v39  ;;  %v1203_v41 = vpop.f32.mrb[1].mxu0  ;;  %v379_v45 = vpop.f32.mrb[0].mxu1 }
  0xee   : > { %v350_v42 = vpop.f32.mrb[2].mxu0  ;;  %v380_v46 = vadd.f32 %v1731_v38, %v379_v45  ;;  %v1219_v47 = vpop.f32.mrb[1].mxu1  ;;  %v1769_v41 = vld [vmem:[%s1942_s4 + $0x1] ss:$0 sm:$0xff] }
  0xef   : > { %v351_v43 = vadd.f32 %v1731_v38, %v350_v42  ;;  %v1204_v44 = vpop.f32.mrb[3].mxu0  ;;  %v402_v48 = vmax.f32 %v348_v40, 0.0  ;;  %v382_v50 = vpop.f32.mrb[2].mxu1  ;;  %v1430_v40 = vld [vmem:[%s1941_s3 + $0x38] sm:$0xff]  }
  0xf0   : > { %v410_v51 = vmax.f32 %v380_v46, 0.0  ;;  %v383_v52 = vadd.f32 %v1731_v38, %v382_v50  ;;  %v1220_v53 = vpop.f32.mrb[3].mxu1 }
  0xf1   : > { %v403_v49 = vmax.f32 %v351_v43, 0.0 }
  0xf2   : > { %v411_v56 = vmax.f32 %v383_v52, 0.0 }
  0xf3   : > { %v416_v54 = vpack.c.bf16 %v403_v49, %v402_v48 }
  0xf4   : > { %v355_v55 = vpop.f32.mrb[4].mxu0  ;;  %v420_v60 = vpack.c.bf16 %v411_v56, %v410_v51 }
  0xf5   : > { %v356_v57 = vadd.f32 %v1731_v38, %v355_v55  ;;  %v1207_v58 = vpop.f32.mrb[5].mxu0  ;;  %1246 = vmatmul.mubr.bf16.vlgmr.msra.gmra.mrb[12].mxu1 %v416_v54  ;;  %v387_v63 = vpop.f32.mrb[4].mxu1 }
  0xf6   : > { %v358_v59 = vpop.f32.mrb[6].mxu0  ;;  %1249 = vmatprep.mubr.msk.bf16.mxu1 %vm1552_vm0, %v1551_v1  ;;  %v388_v0 = vadd.f32 %v1731_v38, %v387_v63  ;;  %v1223_v2 = vpop.f32.mrb[5].mxu1 }
  0xf7   : > { %v359_v61 = vadd.f32 %v1731_v38, %v358_v59  ;;  %v1208_v62 = vpop.f32.mrb[7].mxu0  ;;  %v404_v3 = vmax.f32 %v356_v57, 0.0  ;;  %v390_v5 = vpop.f32.mrb[6].mxu1 }
  0xf8   : > { %v412_v6 = vmax.f32 %v388_v0, 0.0  ;;  %v391_v7 = vadd.f32 %v1731_v38, %v390_v5  ;;  %v1224_v8 = vpop.f32.mrb[7].mxu1 }
  0xf9   : > { %v405_v4 = vmax.f32 %v359_v61, 0.0 }
  0xfa   : > { %v413_v11 = vmax.f32 %v391_v7, 0.0 }
  0xfb   : > { %v417_v9 = vpack.c.bf16 %v405_v4, %v404_v3 }
  0xfc   : > { %v363_v10 = vpop.f32.mrb[8].mxu0  ;;  %v421_v15 = vpack.c.bf16 %v413_v11, %v412_v6 }
  0xfd   : > { %v364_v12 = vadd.f32 %v1731_v38, %v363_v10  ;;  %v1211_v13 = vpop.f32.mrb[9].mxu0  ;;  %1250 = vmatmul.mubr.bf16.gmra.mrb[16].mxu1 %v417_v9  ;;  %v395_v18 = vpop.f32.mrb[8].mxu1 }
  0xfe   : > { %v366_v14 = vpop.f32.mrb[10].mxu0  ;;  %1253 = vmatprep.mubr.msk.bf16.mxu1 %vm1552_vm0, %v1551_v1  ;;  %v396_v19 = vadd.f32 %v1731_v38, %v395_v18  ;;  %v1227_v20 = vpop.f32.mrb[9].mxu1 }
  0xff   : > { %v367_v16 = vadd.f32 %v1731_v38, %v366_v14  ;;  %v1212_v17 = vpop.f32.mrb[11].mxu0  ;;  %v406_v21 = vmax.f32 %v364_v12, 0.0  ;;  %v398_v23 = vpop.f32.mrb[10].mxu1 }
 0x100   : > { %v414_v24 = vmax.f32 %v396_v19, 0.0  ;;  %v399_v25 = vadd.f32 %v1731_v38, %v398_v23  ;;  %v1228_v26 = vpop.f32.mrb[11].mxu1 }
 0x101   : > { %v407_v22 = vmax.f32 %v367_v16, 0.0 }
 0x102   : > { %v415_v29 = vmax.f32 %v399_v25, 0.0 }
 0x103   : > { %v418_v27 = vpack.c.bf16 %v407_v22, %v406_v21 }
 0x104   : > { %v371_v28 = vpop.f32.mrb[12].mxu0  ;;  %v422_v33 = vpack.c.bf16 %v415_v29, %v414_v24 }
 0x105   : > { %v372_v30 = vadd.f32 %v1731_v38, %v371_v28  ;;  %v1215_v31 = vpop.f32.mrb[13].mxu0  ;;  %1254 = vmatmul.mubr.bf16.gmra.mrb[20].mxu1 %v418_v27 }
 0x106   : > { %v374_v32 = vpop.f32.mrb[14].mxu0  ;;  %1257 = vmatprep.mubr.msk.bf16.mxu1 %vm1552_vm0, %v1551_v1 }
 0x107   : > { %v375_v34 = vadd.f32 %v1731_v38, %v374_v32  ;;  %v1216_v35 = vpop.f32.mrb[15].mxu0  ;;  %v408_v36 = vmax.f32 %v372_v30, 0.0  ;;  %v1429_v38 = vld [vmem:[%s1941_s3 + $0x30] sm:$0xff]  }
 0x108   : > { %1286 = vmatpush3.bf16.msra.mxu0 %v1429_v38 }
 0x109   : > { %v409_v37 = vmax.f32 %v375_v34, 0.0  ;;  %1287 = vmatprep.subr.bf16.mxu0 %v1551_v1 }
 0x10b   : > { %v419_v39 = vpack.c.bf16 %v409_v37, %v408_v36 }
 0x10c   : > { %1288 = vmatpush3.bf16.msra.mxu0 %v1430_v40 }
 0x10d   : > { %1258 = vmatmul.mubr.bf16.gmra.mrb[24].mxu1 %v419_v39 }
 0x10e   : > { %1261 = vmatprep.mubr.msk.bf16.mxu1 %vm1552_vm0, %v1551_v1 }
 0x115   : > { %1262 = vmatmul.mubr.bf16.gmra.mrb[28].mxu1 %v420_v60 }
 0x116   : > { %1265 = vmatprep.mubr.msk.bf16.mxu1 %vm1552_vm0, %v1551_v1 }
 0x11d   : > { %1266 = vmatmul.mubr.bf16.gmra.mrb[32].mxu1 %v421_v15 }
 0x11e   : > { %1269 = vmatprep.mubr.msk.bf16.mxu1 %vm1552_vm0, %v1551_v1 }
 0x125   : > { %1270 = vmatmul.mubr.bf16.gmra.mrb[36].mxu1 %v422_v33 }
 0x1c8   : > { %v525_v42 = vpop.f32.mrb[12].mxu1 }
 0x1c9   : > { %v526_v43 = vadd.f32 %v1769_v41, %v525_v42  ;;  %v1247_v44 = vpop.f32.mrb[13].mxu1 }
 0x1ca   : > { %v528_v45 = vpop.f32.mrb[14].mxu1 }
 0x1cb   : > { %v529_v46 = vadd.f32 %v1769_v41, %v528_v45  ;;  %v1248_v47 = vpop.f32.mrb[15].mxu1  ;;  %v580_v48 = vmax.f32 %v526_v43, 0.0  ;;  %v1800_v43 = vld [vmem:[%s1942_s4 + $0x2] ss:$0 sm:$0xff] }
 0x1cd   : > { %v581_v49 = vmax.f32 %v529_v46, 0.0 }
 0x1cf   : > { %v594_v50 = vpack.c.bf16 %v581_v49, %v580_v48 }
 0x1d0   : > { %v533_v51 = vpop.f32.mrb[16].mxu1 }
 0x1d1   : > { %v534_v52 = vadd.f32 %v1769_v41, %v533_v51  ;;  %v1251_v53 = vpop.f32.mrb[17].mxu1  ;;  %1290 = vmatmul.mubr.bf16.vlgmr.msra.gmra.mrb[16].mxu0 %v594_v50 }
 0x1d2   : > { %v536_v54 = vpop.f32.mrb[18].mxu1  ;;  %1293 = vmatprep.mubr.msk.bf16.mxu0 %vm1552_vm0, %v1551_v1 }
 0x1d3   : > { %v537_v55 = vadd.f32 %v1769_v41, %v536_v54  ;;  %v1252_v56 = vpop.f32.mrb[19].mxu1  ;;  %v582_v57 = vmax.f32 %v534_v52, 0.0 }
 0x1d5   : > { %v583_v58 = vmax.f32 %v537_v55, 0.0 }
 0x1d7   : > { %v595_v59 = vpack.c.bf16 %v583_v58, %v582_v57 }
 0x1d8   : > { %v541_v60 = vpop.f32.mrb[20].mxu1 }
 0x1d9   : > { %v542_v61 = vadd.f32 %v1769_v41, %v541_v60  ;;  %v1255_v62 = vpop.f32.mrb[21].mxu1  ;;  %1294 = vmatmul.mubr.bf16.gmra.mrb[20].mxu0 %v595_v59 }
 0x1da   : > { %v544_v63 = vpop.f32.mrb[22].mxu1  ;;  %1297 = vmatprep.mubr.msk.bf16.mxu0 %vm1552_vm0, %v1551_v1 }
 0x1db   : > { %v545_v0 = vadd.f32 %v1769_v41, %v544_v63  ;;  %v1256_v2 = vpop.f32.mrb[23].mxu1  ;;  %v584_v3 = vmax.f32 %v542_v61, 0.0 }
 0x1dd   : > { %v585_v4 = vmax.f32 %v545_v0, 0.0 }
 0x1df   : > { %v596_v5 = vpack.c.bf16 %v585_v4, %v584_v3 }
 0x1e0   : > { %v549_v6 = vpop.f32.mrb[24].mxu1 }
 0x1e1   : > { %v550_v7 = vadd.f32 %v1769_v41, %v549_v6  ;;  %v1259_v8 = vpop.f32.mrb[25].mxu1  ;;  %1298 = vmatmul.mubr.bf16.gmra.mrb[24].mxu0 %v596_v5 }
 0x1e2   : > { %v552_v9 = vpop.f32.mrb[26].mxu1  ;;  %1301 = vmatprep.mubr.msk.bf16.mxu0 %vm1552_vm0, %v1551_v1 }
 0x1e3   : > { %v553_v10 = vadd.f32 %v1769_v41, %v552_v9  ;;  %v1260_v11 = vpop.f32.mrb[27].mxu1  ;;  %v586_v12 = vmax.f32 %v550_v7, 0.0 }
 0x1e5   : > { %v587_v13 = vmax.f32 %v553_v10, 0.0 }
 0x1e7   : > { %v597_v14 = vpack.c.bf16 %v587_v13, %v586_v12 }
 0x1e8   : > { %v557_v15 = vpop.f32.mrb[28].mxu1 }
 0x1e9   : > { %v558_v16 = vadd.f32 %v1769_v41, %v557_v15  ;;  %v1263_v17 = vpop.f32.mrb[29].mxu1  ;;  %1302 = vmatmul.mubr.bf16.gmra.mrb[28].mxu0 %v597_v14 }
 0x1ea   : > { %v560_v18 = vpop.f32.mrb[30].mxu1  ;;  %1305 = vmatprep.mubr.msk.bf16.mxu0 %vm1552_vm0, %v1551_v1 }
 0x1eb   : > { %v561_v19 = vadd.f32 %v1769_v41, %v560_v18  ;;  %v1264_v20 = vpop.f32.mrb[31].mxu1  ;;  %v588_v21 = vmax.f32 %v558_v16, 0.0 }
 0x1ed   : > { %v589_v22 = vmax.f32 %v561_v19, 0.0 }
 0x1ef   : > { %v598_v23 = vpack.c.bf16 %v589_v22, %v588_v21 }
 0x1f0   : > { %v565_v24 = vpop.f32.mrb[32].mxu1 }
 0x1f1   : > { %v566_v25 = vadd.f32 %v1769_v41, %v565_v24  ;;  %v1267_v26 = vpop.f32.mrb[33].mxu1  ;;  %1306 = vmatmul.mubr.bf16.gmra.mrb[32].mxu0 %v598_v23 }
 0x1f2   : > { %v568_v27 = vpop.f32.mrb[34].mxu1  ;;  %1309 = vmatprep.mubr.msk.bf16.mxu0 %vm1552_vm0, %v1551_v1 }
 0x1f3   : > { %v569_v28 = vadd.f32 %v1769_v41, %v568_v27  ;;  %v1268_v29 = vpop.f32.mrb[35].mxu1  ;;  %v590_v30 = vmax.f32 %v566_v25, 0.0 }
 0x1f5   : > { %v591_v31 = vmax.f32 %v569_v28, 0.0 }
 0x1f7   : > { %v599_v32 = vpack.c.bf16 %v591_v31, %v590_v30 }
 0x1f8   : > { %v573_v33 = vpop.f32.mrb[36].mxu1 }
 0x1f9   : > { %v574_v34 = vadd.f32 %v1769_v41, %v573_v33  ;;  %v1271_v35 = vpop.f32.mrb[37].mxu1  ;;  %1310 = vmatmul.mubr.bf16.gmra.mrb[36].mxu0 %v599_v32 }
 0x1fa   : > { %v576_v36 = vpop.f32.mrb[38].mxu1  ;;  %1313 = vmatprep.mubr.msk.bf16.mxu0 %vm1552_vm0, %v1551_v1 }
 0x1fb   : > { %v577_v37 = vadd.f32 %v1769_v41, %v576_v36  ;;  %v1272_v39 = vpop.f32.mrb[39].mxu1  ;;  %v592_v38 = vmax.f32 %v574_v34, 0.0 }
 0x1fd   : > { %v593_v40 = vmax.f32 %v577_v37, 0.0 }
 0x1ff   : > { %v600_v42 = vpack.c.bf16 %v593_v40, %v592_v38 }
 0x201   : > { %1314 = vmatmul.mubr.bf16.gmra.mrb[40].mxu0 %v600_v42 }
 0x2a4   : > { %v699_v44 = vpop.f32.mrb[16].mxu0 }
 0x2a5   : > { %v758_v45 = vadd.f32 %v1800_v43, %v699_v44  ;;  %v1291_v46 = vpop.f32.mrb[17].mxu0 }
 0x2a6   : > { %v702_v47 = vpop.f32.mrb[18].mxu0 }
 0x2a7   : > { %v772_v48 = vmul.f32 0.5, %v758_v45  ;;  %v759_v1 = vadd.f32 %v1800_v43, %v702_v47  ;;  %v1292_v41 = vpop.f32.mrb[19].mxu0 }
 0x2a9   : > { %1431 = vtanh.f32 %v772_v48  ;;  %v773_v49 = vmul.f32 0.5, %v759_v1 }
 0x2ab   : > { %1433 = vtanh.f32 %v773_v49 }
 0x2ac   : > { %v707_v50 = vpop.f32.mrb[20].mxu0 }
 0x2ad   : > { %v760_v51 = vadd.f32 %v1800_v43, %v707_v50  ;;  %v1295_v52 = vpop.f32.mrb[21].mxu0 }
 0x2ae   : > { %v710_v53 = vpop.f32.mrb[22].mxu0 }
 0x2af   : > { %v774_v54 = vmul.f32 0.5, %v760_v51  ;;  %v761_v55 = vadd.f32 %v1800_v43, %v710_v53  ;;  %v1296_v56 = vpop.f32.mrb[23].mxu0 }
 0x2b1   : > { %1435 = vtanh.f32 %v774_v54  ;;  %v775_v57 = vmul.f32 0.5, %v761_v55 }
 0x2b3   : > { %v1432_v58 = vpop.eup %1431  ;;  %1437 = vtanh.f32 %v775_v57 }
 0x2b4   : > { %v800_v59 = vadd.f32 1.0, %v1432_v58  ;;  %v715_v60 = vpop.f32.mrb[24].mxu0 }
 0x2b5   : > { %v1434_v61 = vpop.eup %1433  ;;  %v762_v62 = vadd.f32 %v1800_v43, %v715_v60  ;;  %v1299_v63 = vpop.f32.mrb[25].mxu0 }
 0x2b6   : > { %v814_v0 = vmul.f32 0.5, %v800_v59  ;;  %v801_v2 = vadd.f32 1.0, %v1434_v61  ;;  %v718_v3 = vpop.f32.mrb[26].mxu0 }
 0x2b7   : > { %v776_v4 = vmul.f32 0.5, %v762_v62  ;;  %v763_v5 = vadd.f32 %v1800_v43, %v718_v3  ;;  %v1300_v6 = vpop.f32.mrb[27].mxu0 }
 0x2b8   : > { %829 = vst.msk [vmem:[%s1809_s18] sm:$0xff] %vm828_vm2, %v814_v0  ;;  %v815_v7 = vmul.f32 0.5, %v801_v2 }
 0x2b9   : > { %1439 = vtanh.f32 %v776_v4  ;;  %v777_v8 = vmul.f32 0.5, %v763_v5 }
 0x2ba   : > { %830 = vst.msk [vmem:[%s1809_s18 + $0x8] sm:$0xff] %vm828_vm2, %v815_v7 }
 0x2bb   : > { %v1436_v9 = vpop.eup %1435  ;;  %1441 = vtanh.f32 %v777_v8 }
 0x2bc   : > { %v802_v10 = vadd.f32 1.0, %v1436_v9  ;;  %v723_v11 = vpop.f32.mrb[28].mxu0 }
 0x2bd   : > { %v1438_v12 = vpop.eup %1437  ;;  %v764_v13 = vadd.f32 %v1800_v43, %v723_v11  ;;  %v1303_v14 = vpop.f32.mrb[29].mxu0 }
 0x2be   : > { %v816_v15 = vmul.f32 0.5, %v802_v10  ;;  %v803_v16 = vadd.f32 1.0, %v1438_v12  ;;  %v726_v17 = vpop.f32.mrb[30].mxu0 }
 0x2bf   : > { %v778_v18 = vmul.f32 0.5, %v764_v13  ;;  %v765_v19 = vadd.f32 %v1800_v43, %v726_v17  ;;  %v1304_v20 = vpop.f32.mrb[31].mxu0 }
 0x2c0   : > { %831 = vst.msk [vmem:[%s1809_s18 + $0x10] sm:$0xff] %vm828_vm2, %v816_v15  ;;  %v817_v21 = vmul.f32 0.5, %v803_v16 }
 0x2c1   : > { %1443 = vtanh.f32 %v778_v18  ;;  %v779_v22 = vmul.f32 0.5, %v765_v19 }
 0x2c2   : > { %832 = vst.msk [vmem:[%s1809_s18 + $0x18] sm:$0xff] %vm828_vm2, %v817_v21 }
 0x2c3   : > { %v1440_v23 = vpop.eup %1439  ;;  %1445 = vtanh.f32 %v779_v22 }
 0x2c4   : > { %v804_v24 = vadd.f32 1.0, %v1440_v23  ;;  %v731_v25 = vpop.f32.mrb[32].mxu0 }
 0x2c5   : > { %v1442_v26 = vpop.eup %1441  ;;  %v766_v27 = vadd.f32 %v1800_v43, %v731_v25  ;;  %v1307_v28 = vpop.f32.mrb[33].mxu0 }
 0x2c6   : > { %v818_v29 = vmul.f32 0.5, %v804_v24  ;;  %v805_v30 = vadd.f32 1.0, %v1442_v26  ;;  %v734_v31 = vpop.f32.mrb[34].mxu0 }
 0x2c7   : > { %v780_v32 = vmul.f32 0.5, %v766_v27  ;;  %v767_v33 = vadd.f32 %v1800_v43, %v734_v31  ;;  %v1308_v34 = vpop.f32.mrb[35].mxu0 }
 0x2c8   : > { %833 = vst.msk [vmem:[%s1809_s18 + $0x20] sm:$0xff] %vm828_vm2, %v818_v29  ;;  %v819_v35 = vmul.f32 0.5, %v805_v30 }
 0x2c9   : > { %1447 = vtanh.f32 %v780_v32  ;;  %v781_v36 = vmul.f32 0.5, %v767_v33 }
 0x2ca   : > { %834 = vst.msk [vmem:[%s1809_s18 + $0x28] sm:$0xff] %vm828_vm2, %v819_v35 }
 0x2cb   : > { %v1444_v37 = vpop.eup %1443  ;;  %1449 = vtanh.f32 %v781_v36 }
 0x2cc   : > { %v806_v39 = vadd.f32 1.0, %v1444_v37  ;;  %v739_v38 = vpop.f32.mrb[36].mxu0 }
 0x2cd   : > { %v1446_v40 = vpop.eup %1445  ;;  %v768_v42 = vadd.f32 %v1800_v43, %v739_v38  ;;  %v1311_v44 = vpop.f32.mrb[37].mxu0 }
 0x2ce   : > { %v820_v45 = vmul.f32 0.5, %v806_v39  ;;  %v807_v46 = vadd.f32 1.0, %v1446_v40  ;;  %v742_v47 = vpop.f32.mrb[38].mxu0 }
 0x2cf   : > { %v782_v48 = vmul.f32 0.5, %v768_v42  ;;  %v769_v1 = vadd.f32 %v1800_v43, %v742_v47  ;;  %v1312_v41 = vpop.f32.mrb[39].mxu0 }
 0x2d0   : > { %835 = vst.msk [vmem:[%s1809_s18 + $0x30] sm:$0xff] %vm828_vm2, %v820_v45  ;;  %v821_v49 = vmul.f32 0.5, %v807_v46 }
 0x2d1   : > { %1451 = vtanh.f32 %v782_v48  ;;  %v783_v50 = vmul.f32 0.5, %v769_v1 }
 0x2d2   : > { %836 = vst.msk [vmem:[%s1809_s18 + $0x38] sm:$0xff] %vm828_vm2, %v821_v49 }
 0x2d3   : > { %v1448_v51 = vpop.eup %1447  ;;  %1453 = vtanh.f32 %v783_v50 }
 0x2d4   : > { %v808_v52 = vadd.f32 1.0, %v1448_v51  ;;  %v747_v53 = vpop.f32.mrb[40].mxu0 }
 0x2d5   : > { %v1450_v54 = vpop.eup %1449  ;;  %v770_v55 = vadd.f32 %v1800_v43, %v747_v53  ;;  %v1315_v56 = vpop.f32.mrb[41].mxu0 }
 0x2d6   : > { %v822_v57 = vmul.f32 0.5, %v808_v52  ;;  %v809_v58 = vadd.f32 1.0, %v1450_v54  ;;  %v750_v59 = vpop.f32.mrb[42].mxu0 }
 0x2d7   : > { %v784_v60 = vmul.f32 0.5, %v770_v55  ;;  %v771_v61 = vadd.f32 %v1800_v43, %v750_v59  ;;  %v1316_v62 = vpop.f32.mrb[43].mxu0 }
 0x2d8   : > { %837 = vst.msk [vmem:[%s1809_s18 + $0x40] sm:$0xff] %vm828_vm2, %v822_v57  ;;  %v823_v63 = vmul.f32 0.5, %v809_v58 }
 0x2d9   : > { %1455 = vtanh.f32 %v784_v60  ;;  %v785_v0 = vmul.f32 0.5, %v771_v61 }
 0x2da   : > { %838 = vst.msk [vmem:[%s1809_s18 + $0x48] sm:$0xff] %vm828_vm2, %v823_v63 }
 0x2db   : > { %v1452_v2 = vpop.eup %1451  ;;  %1457 = vtanh.f32 %v785_v0 }
 0x2dc   : > { %v810_v3 = vadd.f32 1.0, %v1452_v2 }
 0x2dd   : > { %v1454_v4 = vpop.eup %1453 }
 0x2de   : > { %v824_v5 = vmul.f32 0.5, %v810_v3  ;;  %v811_v6 = vadd.f32 1.0, %v1454_v4 }
 0x2e0   : > { %839 = vst.msk [vmem:[%s1809_s18 + $0x50] sm:$0xff] %vm828_vm2, %v824_v5  ;;  %v825_v7 = vmul.f32 0.5, %v811_v6 }
 0x2e2   : > { %840 = vst.msk [vmem:[%s1809_s18 + $0x58] sm:$0xff] %vm828_vm2, %v825_v7 }
 0x2e3   : > { %v1456_v43 = vpop.eup %1455 }
 0x2e4   : > { %v812_v8 = vadd.f32 1.0, %v1456_v43  ;;  %849 = sbr.rel (!%p1608_p4) target bundleno = 808 (0x328), region = 44 }
 0x2e5   : > { %v1458_v9 = vpop.eup %1457 }
 0x2e6   : > { %v826_v10 = vmul.f32 0.5, %v812_v8  ;;  %v813_v11 = vadd.f32 1.0, %v1458_v9 }
 0x2e8   : > { %841 = vst.msk [vmem:[%s1809_s18 + $0x60] sm:$0xff] %vm828_vm2, %v826_v10  ;;  %v827_v12 = vmul.f32 0.5, %v813_v11 }
 0x2ea   : > { %842 = vst.msk [vmem:[%s1809_s18 + $0x68] sm:$0xff] %vm828_vm2, %v827_v12 }
 0x2eb   : > { %s1952_s16 = smov (!%p852_p8, %s851_s16), 14 }
 0x2ec   : > { %s1145_s27 = sshll.u32 %s1952_s16, 7 }
 0x2ed   : > { %p1148_p9 = scmp.eq.s32.totalorder %s1145_s27, 0 }
 0x2ee   : > { %1459 = sdivrem.u32 (!%p1148_p9), %s1952_s16, 14 }
 0x2ef   : > { %860 = sbr.rel (%p1148_p9) target bundleno = 808 (0x328), region = 48 }
 0x2f7   : > { %s1860_s26 = spop.drf %1459 }
 0x2f8   : > { %p1149_p10 = scmp.le.s32.totalorder %s1860_s26, 0 }
 0x2f9   : > { %s1945_s21 = smov (!%p1149_p10), %s1854_s24  ;;  %s1946_s6 = smov (!%p1149_p10), %s1809_s18 }
 0x2fa   : > { %1068 = sbr.rel (%p1149_p10) target bundleno = 779 (0x30b), region = 124  ;;  %s1869_s28 = smov (!%p1149_p10), 0  }
 0x2fb   : > { %s1871_s29 = smov (!%p1149_p10), 0  }
 0x301 LB: >> { %v950_v13 = vld [vmem:[%s1525_s6] sm:$0xff]  ;;  %v952_v14 = vld [vmem:[%s1525_s6 + $0x8] sm:$0xff]  ;;  %v954_v15 = vld [vmem:[%s1525_s6 + $0x10] sm:$0xff]  ;;  %s978_s30 = sadd.s32 1, %s1529_s28  ;;  %s944_s29 = sadd.s32 1, %s1533_s29   ;;  %s1533_s29 = sphi %s1871_s29, %s944_s29   ;;  %s1529_s28 = sphi %s1869_s28, %s1947_s28   ;;  %s1525_s6 = sphi %s1946_s6, %s983_s6   ;;  %s1521_s21 = sphi %s1945_s21, %s984_s21  }
 0x302   : >> { %951 = vst [vmem:[%s1521_s21] sm:$0xff] %v950_v13  ;;  %953 = vst [vmem:[%s1521_s21 + $0x8] sm:$0xff] %v952_v14  ;;  %v956_v16 = vld [vmem:[%s1525_s6 + $0x18] sm:$0xff]  ;;  %v958_v17 = vld [vmem:[%s1525_s6 + $0x20] sm:$0xff]  ;;  %p979_p11 = scmp.ge.s32.totalorder %s978_s30, %s1860_s26  ;;  %p943_p12 = scmp.ge.s32.totalorder %s944_s29, %s1860_s26 }
 0x303   : >> { %955 = vst [vmem:[%s1521_s21 + $0x10] sm:$0xff] %v954_v15  ;;  %v960_v18 = vld [vmem:[%s1525_s6 + $0x28] sm:$0xff]  ;;  %957 = vst [vmem:[%s1521_s21 + $0x18] sm:$0xff] %v956_v16  ;;  %v962_v19 = vld [vmem:[%s1525_s6 + $0x30] sm:$0xff] }
 0x304   : >> { %959 = vst [vmem:[%s1521_s21 + $0x20] sm:$0xff] %v958_v17  ;;  %961 = vst [vmem:[%s1521_s21 + $0x28] sm:$0xff] %v960_v18  ;;  %v964_v20 = vld [vmem:[%s1525_s6 + $0x38] sm:$0xff]  ;;  %v966_v21 = vld [vmem:[%s1525_s6 + $0x40] sm:$0xff]  ;;  %s1954_s30 = smov (%p979_p11, %s978_s30), 0  ;;  %946 = sbr.rel (!%p943_p12) target bundleno = 769 (0x301), region = 130 }
 0x305   : >> { %963 = vst [vmem:[%s1521_s21 + $0x30] sm:$0xff] %v962_v19  ;;  %965 = vst [vmem:[%s1521_s21 + $0x38] sm:$0xff] %v964_v20  ;;  %v968_v22 = vld [vmem:[%s1525_s6 + $0x48] sm:$0xff]  ;;  %v970_v23 = vld [vmem:[%s1525_s6 + $0x50] sm:$0xff]  ;;  %s981_s7 = smul.u32 112, %s1954_s30  ;;  %s1947_s28 = smov %s1954_s30 }
 0x306   : >> { %967 = vst [vmem:[%s1521_s21 + $0x40] sm:$0xff] %v966_v21  ;;  %v972_v24 = vld [vmem:[%s1525_s6 + $0x58] sm:$0xff]  ;;  %969 = vst [vmem:[%s1521_s21 + $0x48] sm:$0xff] %v968_v22  ;;  %v974_v25 = vld [vmem:[%s1525_s6 + $0x60] sm:$0xff] }
 0x307   : >> { %971 = vst [vmem:[%s1521_s21 + $0x50] sm:$0xff] %v970_v23  ;;  %973 = vst [vmem:[%s1521_s21 + $0x58] sm:$0xff] %v972_v24  ;;  %v976_v26 = vld [vmem:[%s1525_s6 + $0x68] sm:$0xff]  ;;  %s983_s6 = scalar_lea.vmem %s1809_s18, %s981_s7 [#allocation2]  }
 0x308   : >> { %975 = vst [vmem:[%s1521_s21 + $0x60] sm:$0xff] %v974_v25  ;;  %977 = vst [vmem:[%s1521_s21 + $0x68] sm:$0xff] %v976_v26  ;;  %s984_s21 = scalar_lea.vmem %s1854_s24, %s981_s7  }
 0x30b PF: > { %1461 = sdivrem.u32 %s1952_s16, 14 }
 0x30c   : > { %s1150_s8 = smul.u32 112, %s1860_s26 }
 0x30e   : > { %s989_s9 = scalar_lea.vmem %s1809_s18, %s1150_s8 [#allocation2]   ;;  %s991_s10 = scalar_lea.vmem %s1854_s24, %s1150_s8  }
 0x314   : > { %s1462_s11 = spop.drf %1461 }
 0x315   : > { %p1152_p13 = scmp.le.s32.totalorder %s1462_s11, 0 }
 0x316   : > { %s1535_s12 = smov (!%p1152_p13), %s991_s10   ;;  %s1539_s13 = smov (!%p1152_p13), %s989_s9  }
 0x317   : > { %1082 = sbr.rel (%p1152_p13) target bundleno = 808 (0x328), region = 135  ;;  %s1543_s14 = smov (!%p1152_p13), 0  }
 0x318   : > { %s1547_s15 = smov (!%p1152_p13), 0  }
 0x31e LB: >> { %v1001_v27 = vld [vmem:[%s1541_s13] sm:$0xff]  ;;  %s1003_s17 = sadd.s32 1, %s1545_s14  ;;  %s995_s15 = sadd.s32 1, %s1549_s15   ;;  %s1549_s15 = sphi %s1547_s15, %s995_s15   ;;  %s1545_s14 = sphi %s1543_s14, %s1544_s14   ;;  %s1541_s13 = sphi %s1539_s13, %s1008_s13   ;;  %s1537_s12 = sphi %s1535_s12, %s1009_s12  }
 0x31f   : >> { %1002 = vst [vmem:[%s1537_s12] sm:$0xff] %v1001_v27  ;;  %p1004_p0 = scmp.ge.s32.totalorder %s1003_s17, %s1462_s11  ;;  %p994_p1 = scmp.ge.s32.totalorder %s995_s15, %s1462_s11 }
 0x321   : >> { %s1956_s17 = smov (%p1004_p0, %s1003_s17), 0  ;;  %997 = sbr.rel (!%p994_p1) target bundleno = 798 (0x31e), region = 141 }
 0x322   : >> { %s1153_s18 = sshll.u32 %s1956_s17, 3  ;;  %s1544_s14 = smov %s1956_s17  }
 0x323   : >> { %s1008_s13 = scalar_lea.vmem %s989_s9, %s1153_s18 [#allocation2]   ;;  %s1009_s12 = scalar_lea.vmem %s991_s10, %s1153_s18  }
 0x328 PF: > { %p12_p2 = scmp.ge.s32.totalorder %s1598_s22, 4   ;;  %s1948_s18 = smov %s1513_s19 }
 0x329   : > { %s1949_s19 = smov %s1606_s25  ;;  %s1950_s20 = smov %s1598_s22 }
 0x32a   :  { %14 = sbr.rel (!%p12_p2) target bundleno = 2 (0x2), region = 152 }

</bundles_post_ra>
